<compile_context>
chip_gen: v7x
topology: tpu7x:2x2x1
jax: 0.10.0
libtpu: 0.0.40
codegen_flags: <defaults>
</compile_context>

<pallas_src>
import jax
import jax.numpy as jnp
from jax import lax
from jax.experimental import pallas as pl
from jax.experimental.pallas import tpu as pltpu


def _round_up(n, m):
    return ((n + m - 1) // m) * m


def _logreg_vpu_kernel(x_ref, w_ref, b_ref, o_ref):
    # out_dim == 1 path.
    # x_ref: (TB, D) VMEM, w_ref: (1, D) VMEM, b_ref: (1, 1) SMEM, o_ref: (TB, 1) VMEM
    x = x_ref[...].astype(jnp.float32)
    w = w_ref[...].astype(jnp.float32)             # (1, D) broadcasts over rows
    acc = jnp.sum(x * w, axis=-1, keepdims=True)   # VPU mul + XLU lane reduce, f32 acc
    o_ref[...] = (acc + b_ref[0, 0]).astype(o_ref.dtype)


def _linear_mxu_kernel(x_ref, w_ref, b_ref, o_ref):
    # General out_dim path. Weight kept as (out_dim, D): lane axis stays D
    # (lane-dense), and the MXU contracts the transposed layout natively —
    # no wrapper transpose (saves an HBM read+write of the weight per call).
    y = lax.dot_general(
        x_ref[...], w_ref[...],
        dimension_numbers=(((1,), (1,)), ((), ())),   # contract x dim1 with w dim1
        preferred_element_type=jnp.float32,
    )
    o_ref[...] = (y + b_ref[...].astype(jnp.float32)).astype(o_ref.dtype)


def logistic_regression_forward(x, weight, bias, *,
                                target_tile_bytes=2 << 20,
                                vmem_budget_bytes=40 << 20):
    """y = x @ weight.T + bias (PyTorch nn.Linear semantics)."""
    B, D = x.shape
    out_dim, Dw = weight.shape
    assert Dw == D, "weight must be (out_dim, input_dim)"

    itemsize = jnp.dtype(x.dtype).itemsize
    # Native sublane multiple per dtype: f32 -> 8, bf16 -> 16, int8/fp8 -> 32.
    sub = max(8, 32 // itemsize)
    b_ceil = _round_up(B, sub)

    # Byte-sized batch tile: ~2 MiB of x per tile reaches >=85% of measured
    # HBM roofline; a fixed small row count would leave per-grid-step overhead
    # (~0.35 us) dominating for small D.
    tb = _round_up(max(1, target_tile_bytes // (itemsize * D)), sub)
    tb = min(tb, b_ceil)

    # Prefer >=2 tiles when the batch is big enough so the "parallel" grid axis
    # can actually split work across v7x's two TensorCores.
    if tb == b_ceil and b_ceil >= 4 * sub:
        tb = _round_up((b_ceil + 1) // 2, sub)

    # Keep the double-buffered VMEM footprint under a generation-safe budget
    # (output tile pads lanes to 128; weight tile pads sublanes/lanes too).
    out_lanes = _round_up(out_dim, 128)

    def _footprint(t):
        x_buf = 2 * t * D * itemsize                                   # x double buffer
        o_buf = 2 * t * out_lanes * itemsize                           # out double buffer
        w_buf = 2 * _round_up(out_dim, sub) * _round_up(D, 128) * itemsize
        return x_buf + o_buf + w_buf + (256 << 10)                     # slack

    while tb > sub and _footprint(tb) > vmem_budget_bytes:
        tb = _round_up(tb // 2, sub)
    # TODO(synk): for very large D where even a (sub, D) slab exceeds VMEM, add a
    # K (feature) grid axis with a pl.when-managed f32 accumulator instead of
    # shrinking the batch tile below roofline-efficient sizes.

    # Partial last tile handled by Pallas — no jnp.pad copy of x.
    grid = (pl.cdiv(B, tb),)

    compiler_params = pltpu.CompilerParams(
        dimension_semantics=("parallel",),      # megacore split of batch tiles on v7x
        vmem_limit_bytes=48 << 20,              # raise v5e's 16 MiB default; safe on v7x (64 MiB phys)
    )
    cost = pl.CostEstimate(
        flops=2 * B * D * out_dim,
        transcendentals=0,
        bytes_accessed=itemsize * (B * D + out_dim * D + B * out_dim),
    )

    if out_dim == 1:
        return pl.pallas_call(
            _logreg_vpu_kernel,
            out_shape=jax.ShapeDtypeStruct((B, 1), x.dtype),
            grid=grid,
            in_specs=[
                pl.BlockSpec((tb, D), lambda i: (i, 0)),
                pl.BlockSpec((1, D), lambda i: (0, 0)),              # resident weight row
                pl.BlockSpec(memory_space=pltpu.MemorySpace.SMEM),   # scalar bias, no VMEM tile
            ],
            out_specs=pl.BlockSpec((tb, 1), lambda i: (i, 0)),
            compiler_params=compiler_params,
            cost_estimate=cost,
        )(x, weight, bias.reshape(1, 1))

    return pl.pallas_call(
        _linear_mxu_kernel,
        out_shape=jax.ShapeDtypeStruct((B, out_dim), x.dtype),
        grid=grid,
        in_specs=[
            pl.BlockSpec((tb, D), lambda i: (i, 0)),
            pl.BlockSpec((out_dim, D), lambda i: (0, 0)),            # resident, untransposed
            pl.BlockSpec((1, out_dim), lambda i: (0, 0)),
        ],
        out_specs=pl.BlockSpec((tb, out_dim), lambda i: (i, 0)),
        compiler_params=compiler_params,
        cost_estimate=cost,
    )(x, weight, bias.reshape(1, out_dim))


if __name__ == "__main__":
    key = jax.random.PRNGKey(0)
    kx, kw, kb = jax.random.split(key, 3)

    batch = 8
    input_dim = 32
    output_dim = 1

    x = jax.random.normal(kx, (batch, input_dim), dtype=jnp.float32)
    # Deterministic init mimicking nn.Linear's uniform(-1/sqrt(D), 1/sqrt(D))
    bound = 1.0 / (input_dim ** 0.5)
    weight = jax.random.uniform(
        kw, (output_dim, input_dim), minval=-bound, maxval=bound, dtype=jnp.float32
    )
    bias = jax.random.uniform(
        kb, (output_dim,), minval=-bound, maxval=bound, dtype=jnp.float32
    )

    out = jax.block_until_ready(logistic_regression_forward(x, weight, bias))
    ref = x @ weight.T + bias
    assert out.shape == (batch, output_dim)
    assert jnp.allclose(out, ref, atol=1e-5, rtol=1e-5)

    # Batch not a multiple of the tile: exercises the cdiv grid / partial last
    # tile path (no pad copy of x).
    x2 = jax.random.normal(kx, (13, input_dim), dtype=jnp.float32)
    out_p = jax.block_until_ready(logistic_regression_forward(x2, weight, bias))
    assert out_p.shape == (13, output_dim)
    assert jnp.allclose(out_p, x2 @ weight.T + bias, atol=1e-5, rtol=1e-5)

    # Larger batch: exercises the >=2-tile (megacore) split.
    x3 = jax.random.normal(kx, (40, input_dim), dtype=jnp.float32)
    out_m = jax.block_until_ready(logistic_regression_forward(x3, weight, bias))
    assert jnp.allclose(out_m, x3 @ weight.T + bias, atol=1e-5, rtol=1e-5)

    # General (out_dim > 1) MXU path, untransposed weight.
    out_dim2 = 4
    w2 = jax.random.uniform(
        kw, (out_dim2, input_dim), minval=-bound, maxval=bound, dtype=jnp.float32
    )
    b2 = jax.random.uniform(
        kb, (out_dim2,), minval=-bound, maxval=bound, dtype=jnp.float32
    )
    out2 = jax.block_until_ready(logistic_regression_forward(x, w2, b2))
    assert jnp.allclose(out2, x @ w2.T + b2, atol=1e-5, rtol=1e-5)

    print("KERNEL_OK")
</pallas_src>

<mosaic_0001>
module attributes {stable_mosaic.version = 11 : i64} {
  func.func @_logreg_vpu_kernel(%arg0: i32, %arg1: memref<8x32xf32, #tpu.memory_space<vmem>>, %arg2: memref<1x32xf32, #tpu.memory_space<vmem>>, %arg3: memref<1x1xf32, #tpu.memory_space<smem>>, %arg4: memref<8x1xf32, #tpu.memory_space<vmem>>) attributes {dimension_semantics = [#tpu.dimension_semantics<parallel>], iteration_bounds = array<i64: 1>, scalar_prefetch = 0 : i64, scratch_operands = 0 : i64, tpu.core_type = #tpu.core_type<tc>, window_params = [{transform_indices = @transform_0, window_bounds = array<i64: 8, 32>}, {pipeline_mode = #tpu.pipeline_mode<synchronous>, transform_indices = @transform_1, window_bounds = array<i64: 1, 32>}, {transform_indices = @transform_2, window_bounds = array<i64: 1, 1>}, {transform_indices = @transform_3, window_bounds = array<i64: 8, 1>}]} {
    %c0 = arith.constant 0 : index
    %c0_0 = arith.constant 0 : index
    %0 = vector.load %arg1[%c0, %c0_0] : memref<8x32xf32, #tpu.memory_space<vmem>>, vector<8x32xf32>
    %c0_1 = arith.constant 0 : index
    %c0_2 = arith.constant 0 : index
    %1 = vector.load %arg2[%c0_1, %c0_2] : memref<1x32xf32, #tpu.memory_space<vmem>>, vector<1x32xf32>
    %2 = vector.broadcast %1 : vector<1x32xf32> to vector<8x32xf32>
    %3 = arith.mulf %0, %2 : vector<8x32xf32>
    %cst = arith.constant dense<0.000000e+00> : vector<8xf32>
    %4 = vector.multi_reduction <add>, %3, %cst [1] : vector<8x32xf32> to vector<8xf32>
    %5 = vector.shape_cast %4 : vector<8xf32> to vector<8x1xf32>
    %c0_3 = arith.constant 0 : index
    %c0_4 = arith.constant 0 : index
    %6 = memref.load %arg3[%c0_3, %c0_4] : memref<1x1xf32, #tpu.memory_space<smem>>
    %7 = vector.broadcast %6 : f32 to vector<8x1xf32>
    %8 = arith.addf %5, %7 : vector<8x1xf32>
    %c0_5 = arith.constant 0 : index
    %c0_6 = arith.constant 0 : index
    %9 = vector.load %arg4[%c0_5, %c0_6] : memref<8x1xf32, #tpu.memory_space<vmem>>, vector<8x1xf32>
    tpu.vector_store %arg4[%c0_5, %c0_6], %8 {strides = array<i32>} : memref<8x1xf32, #tpu.memory_space<vmem>>, vector<8x1xf32>,
    return
  }
  func.func @transform_0(%arg0: i32) -> (i32, i32) {
    %c0_i32 = arith.constant 0 : i32
    %c0_i32_0 = arith.constant 0 : i32
    return %arg0, %c0_i32 : i32, i32
  }
  func.func @transform_1(%arg0: i32) -> (i32, i32) {
    %c0_i32 = arith.constant 0 : i32
    %c0_i32_0 = arith.constant 0 : i32
    %c0_i32_1 = arith.constant 0 : i32
    return %c0_i32, %c0_i32_0 : i32, i32
  }
  func.func @transform_2(%arg0: i32) -> (i32, i32) {
    %c0_i32 = arith.constant 0 : i32
    %c0_i32_0 = arith.constant 0 : i32
    %c0_i32_1 = arith.constant 0 : i32
    return %c0_i32, %c0_i32_0 : i32, i32
  }
  func.func @transform_3(%arg0: i32) -> (i32, i32) {
    %c0_i32 = arith.constant 0 : i32
    %c0_i32_0 = arith.constant 0 : i32
    return %arg0, %c0_i32 : i32, i32
  }
}

</mosaic_0001>

<bundles_post_ra>
// kernel: tpu_custom_call.1
= control target key start
LH: loop header
LB: loop body
LE: loop exit
PB: predicated region body
PF: predicated region fallthrough
CT: control target
= control target key end

     0   :  { %9 = vsyncpa [#allocation4], 0  ;;  %s76_s12 = smov [#allocation3]   ;;  %s118_s0 = inlined_call_operand.hbm [shape: f32[8,32], index: 0, kind: input, shape index: {}]   ;;  %s119_s1 = inlined_call_operand.vmem [shape: f32[1,32], index: 1, kind: input, shape index: {}]   ;;  %s120_s2 = inlined_call_operand.<no memory space> [shape: f32[1,1], index: 2, kind: input, shape index: {}]   ;;  %s121_s3 = inlined_call_operand.vmem [shape: f32[8,1], index: 3, kind: output, shape index: {}]  }
   0x1   :  { %s16_s13 = sshll.u32 %s76_s12, 4  ;;  %s52_s16 = scalar_lea.hbm %s118_s0, 128  ;;  %s17_s13 = int_to_ptr.vmem [resolvable:$true] %s16_s13 }
   0x2   :  { %p53_p0 = scmp.ne.s32.totalorder %s118_s0, %s52_s16  ;;  %p56_p1 = scmp.lt.u32.totalorder %s52_s16, %s118_s0 }
   0x4   :  { %p58_p2 = pnand %p56_p1, %p53_p0 }
   0x6   :  { %61 = shalt.err (!%p58_p2)
}
   0x7   :  { %s62_s21 = scalar_lea.vmem %s17_s13, 128  ;;  %p67_p4 = scmp.lt.s32.totalorder %s17_s13, %s17_s13 }
   0x8   :  { %p63_p3 = scmp.ne.s32.totalorder %s17_s13, %s62_s21  ;;  %p68_p5 = scmp.lt.s32.totalorder %s62_s21, %s62_s21 }
   0xa   :  { %p69_p6 = por %p68_p5, %p67_p4 }
   0xc   :  { %p70_p7 = pnand %p69_p6, %p63_p3 }
   0xe   :  { %73 = shalt.err (!%p70_p7)
}
   0xf   :  { %19 = dma.hbm_to_vmem [thread:$0]  %s118_s0, 128, %s17_s13, [#allocation4]  }
  0x10   :  { %74 = dma.done.wait [#allocation4], 128  }
  0x11   :  { %75 = vsyncadd [#allocation4], 4294967168  ;;  %v27_v0 = vld [vmem:[#allocation3] sm:$0xff]  ;;  %vm36_vm0 = vcmask 261120   ;;  %v41_v4 = vstv %s120_s2  ;;  %vm43_vm1 = vcmask 7168  }
  0x12   :  { %v50_v1 = vld [vmem:[%s119_s1] ss:$0 sm:$0xff] }
  0x13   :  { %v35_v2 = vmul.f32 %v50_v1, %v27_v0 }
  0x15   :  { %v37_v3 = vsel %vm36_vm0, %v35_v2, 0.0 }
  0x16   :  { %38 = vadd.xlane.f32.xlu0 %v37_v3 }
  0xa3   :  { %v39_v5 = vpop.xlane.xlu0 %38 }
  0xa4   :  { %v42_v6 = vadd.f32 %v41_v4, %v39_v5 }
  0xa6   :  { %44 = vst.msk [vmem:[%s121_s3] sm:$0xff] %vm43_vm1, %v42_v6 }
  0xa7   :  { %49 = vsyncpa [#allocation4], 1 }

</bundles_post_ra>
